<compile_context>
chip_gen: v7x
topology: tpu7x:2x2x1
jax: 0.10.0
libtpu: 0.0.40
codegen_flags: <defaults>
</compile_context>

<pallas_src>
import functools

import jax
import jax.numpy as jnp
from jax import lax
from jax.experimental import pallas as pl
from jax.experimental.pallas import tpu as pltpu


def _round_up(n, m):
    return ((n + m - 1) // m) * m


def _cdiv(a, b):
    return -(-a // b)


def _vmem_capacity_bytes():
    try:
        return int(pltpu.get_tpu_info().vmem_capacity_bytes)
    except Exception:
        return 64 << 20  # v7x per-TensorCore VMEM; conservative fallback.


def _vmem_estimate(tm, feat, ncls, in_itemsize):
    """Lane-padded, double-buffered VMEM footprint for one grid step."""
    x_tile = _round_up(tm, 16) * _round_up(feat, 128) * in_itemsize
    w_tile = _round_up(ncls, 16) * _round_up(feat, 128) * in_itemsize
    b_tile = _round_up(ncls, 8) * 128 * 4
    o_tile = _round_up(ncls, 8) * _round_up(tm, 128) * 4
    return 2 * (x_tile + w_tile + b_tile + o_tile) + (2 << 20)


def _choose_tile(batch, feat, ncls, in_itemsize, vmem_budget):
    # Target ~2 MiB of streamed x bytes per grid step (per-step overhead ~0.35us
    # dominates small tiles for this HBM-bandwidth-bound kernel).
    target_rows = (2 << 20) // max(feat * in_itemsize, 1)
    tm = int(min(max(_round_up(target_rows, 128), 128), 32768))
    # v7x has 2 TensorCores: keep at least 2 grid steps when the batch is big
    # enough so the "parallel" batch axis can be split across them.
    if batch >= 256:
        tm = min(tm, _round_up(_cdiv(batch, 2), 128))
    # Shrink until the lane-padded, double-buffered footprint fits the budget.
    while tm > 128 and _vmem_estimate(tm, feat, ncls, in_itemsize) > vmem_budget:
        tm = _round_up(tm // 2, 128)
    if batch <= tm:
        return batch, 1  # single block whose dims equal the full array dims
    return tm, _cdiv(batch, tm)


def _logreg_kernel(x_ref, w_ref, b_ref, o_ref, *, emit):
    # x_ref: (tm, D) streamed batch tile            (bf16 or f32)
    # w_ref: (C, D)  resident weight, PyTorch nn.Linear layout
    # b_ref: (C, 1)  resident bias (f32)
    # o_ref: (C, tm) f32 probabilities ["probs"] or (1, tm) int32 labels ["labels"]
    #
    # w @ x^T (q@k^T pattern): class axis on sublanes, batch axis lane-dense.
    # TODO(synk): check the Mosaic dump for a per-step vxpose of the x tile; if
    # it shows up as a vex-slot bottleneck, stage x through a (D, tm) scratch.
    logits = lax.dot_general(
        w_ref[...], x_ref[...],
        dimension_numbers=(((1,), (1,)), ((), ())),   # contract D with D -> (C, tm)
        preferred_element_type=jnp.float32,
    ) + b_ref[...]
    m = jnp.max(logits, axis=0, keepdims=True)        # sublane reduce: nearly free
    if emit == "probs":
        # Numerically stable softmax over classes (math-equivalent to
        # torch.exp(x) / torch.exp(x).sum(dim=1, keepdim=True)).
        e = jnp.exp(logits - m)                       # dense vregs on the EUP
        o_ref[...] = (e / jnp.sum(e, axis=0, keepdims=True)).astype(o_ref.dtype)
    else:  # "labels": argmax(logits) == argmax(softmax(logits)); skip exp entirely
        n_cls = logits.shape[0]
        cls_idx = lax.broadcasted_iota(jnp.int32, logits.shape, 0)
        lab = jnp.min(jnp.where(logits == m, cls_idx, n_cls), axis=0, keepdims=True)
        o_ref[...] = lab.astype(o_ref.dtype)


def _logreg_call(x, weight, bias, emit, block_m, input_dtype):
    B, D = x.shape
    C, D2 = weight.shape
    assert D == D2, (D, D2)

    # bf16 streaming by default (memory-bound on reading x); MXU accumulation
    # stays f32 either way.  Pass input_dtype=jnp.float32 for tight numerics.
    in_dtype = jnp.bfloat16 if input_dtype is None else input_dtype
    x = x.astype(in_dtype)
    weight = weight.astype(in_dtype)
    b2 = bias.reshape(C, 1).astype(jnp.float32)
    itemsize = jnp.dtype(in_dtype).itemsize

    vmem_cap = _vmem_capacity_bytes()
    if block_m is None:
        tm, grid_m = _choose_tile(B, D, C, itemsize, int(vmem_cap * 0.45))
    else:
        tm = B if B <= block_m else _round_up(block_m, 128)
        grid_m = _cdiv(B, tm)

    out_rows = C if emit == "probs" else 1
    out_dtype = jnp.float32 if emit == "probs" else jnp.int32

    vmem_bytes = _vmem_estimate(tm, D, C, itemsize)
    vmem_limit = int(min(max(vmem_bytes, 8 << 20), 0.75 * vmem_cap))

    cost = pl.CostEstimate(
        flops=2 * B * D * C,
        transcendentals=(B * C if emit == "probs" else 0),
        bytes_accessed=(B * D * itemsize + C * D * itemsize + C * 4
                        + out_rows * B * jnp.dtype(out_dtype).itemsize),
    )

    # Weight/bias stay VMEM-resident across the grid (constant index_map).
    # TODO(synk): if the lane-padded, double-buffered weight ever exceeds ~1/4
    # of VMEM (large C*D), tile the feature axis with an accumulator instead.
    out = pl.pallas_call(
        functools.partial(_logreg_kernel, emit=emit),
        out_shape=jax.ShapeDtypeStruct((out_rows, B), out_dtype),
        grid=(grid_m,),
        in_specs=[
            pl.BlockSpec((tm, D), lambda i: (i, 0)),   # x: streamed batch tile
            pl.BlockSpec((C, D), lambda i: (0, 0)),    # weight: resident
            pl.BlockSpec((C, 1), lambda i: (0, 0)),    # bias: resident
        ],
        out_specs=pl.BlockSpec((out_rows, tm), lambda i: (0, i)),  # lane-dense
        compiler_params=pltpu.CompilerParams(
            dimension_semantics=("parallel",),         # batch tiles independent
            vmem_limit_bytes=vmem_limit,
        ),
        cost_estimate=cost,
    )(x, weight, b2)
    return out


def logistic_regression_forward(x, weight, bias, *, block_m=None, input_dtype=None):
    """softmax(x @ weight.T + bias), matching LogisticRegression.forward.

    x: (B, D) f32; weight: (C, D) f32 (PyTorch nn.Linear layout); bias: (C,).
    Returns (B, C) f32 class probabilities.  input_dtype=None streams x/weight
    as bf16 (f32 accumulation); pass jnp.float32 for tight numerics.
    """
    probs_t = _logreg_call(x, weight, bias, "probs", block_m, input_dtype)  # (C, B)
    return probs_t.T                                                        # (B, C)


def logistic_regression_predict(x, weight, bias, *, block_m=None, input_dtype=None):
    """Predicted class labels (B,) int32 -- argmax fused into the kernel."""
    labels = _logreg_call(x, weight, bias, "labels", block_m, input_dtype)  # (1, B)
    return labels[0]


if __name__ == "__main__":
    key = jax.random.PRNGKey(0)
    k_w, k_b, k_x1, k_x2, k_x3, k_x4 = jax.random.split(key, 6)

    batch_size = 2
    input_dim = 32      # feature dimensionality (features_tensor.shape[1])
    num_classes = 8     # number of unique categories

    # PyTorch nn.Linear default init: U(-1/sqrt(input_dim), 1/sqrt(input_dim))
    bound = 1.0 / (input_dim ** 0.5)
    weight = jax.random.uniform(k_w, (num_classes, input_dim),
                                minval=-bound, maxval=bound, dtype=jnp.float32)
    bias = jax.random.uniform(k_b, (num_classes,),
                              minval=-bound, maxval=bound, dtype=jnp.float32)
    x_small = jax.random.normal(k_x1, (batch_size, input_dim), dtype=jnp.float32)

    def ref_forward(xv, w, b):
        logits = jnp.dot(xv, w.T, precision=jax.lax.Precision.HIGHEST) + b
        return jax.nn.softmax(logits, axis=-1)

    def cast_bf16(a):
        return a.astype(jnp.bfloat16).astype(jnp.float32)

    # --- small batch, f32 streaming, single full-array block -----------------
    probs = jax.block_until_ready(
        logistic_regression_forward(x_small, weight, bias, input_dtype=jnp.float32))
    assert probs.shape == (batch_size, num_classes)
    assert jnp.allclose(probs, ref_forward(x_small, weight, bias), atol=1e-5, rtol=1e-5)
    assert jnp.allclose(jnp.sum(probs, axis=1), 1.0, atol=1e-5)

    # --- small batch, default bf16 streaming (f32 MXU accumulation) ----------
    probs_bf = jax.block_until_ready(logistic_regression_forward(x_small, weight, bias))
    ref_bf = ref_forward(cast_bf16(x_small), cast_bf16(weight), bias)
    assert jnp.allclose(probs_bf, ref_bf, atol=1e-4, rtol=1e-4)
    assert jnp.allclose(probs_bf, ref_forward(x_small, weight, bias), atol=3e-2)

    # --- multi-tile even batch (grid of 2 batch tiles), default bf16 ---------
    x_big = jax.random.normal(k_x2, (4096, input_dim), dtype=jnp.float32)
    probs_big = jax.block_until_ready(logistic_regression_forward(x_big, weight, bias))
    assert probs_big.shape == (4096, num_classes)
    assert jnp.allclose(probs_big, ref_forward(cast_bf16(x_big), cast_bf16(weight), bias),
                        atol=1e-4, rtol=1e-4)

    # --- uneven batch (1000 rows -> masked boundary block, no jnp.pad), f32 --
    x_odd = jax.random.normal(k_x3, (1000, input_dim), dtype=jnp.float32)
    probs_odd = jax.block_until_ready(
        logistic_regression_forward(x_odd, weight, bias, input_dtype=jnp.float32))
    assert probs_odd.shape == (1000, num_classes)
    assert jnp.allclose(probs_odd, ref_forward(x_odd, weight, bias), atol=1e-5, rtol=1e-5)

    # --- predict: fused argmax, no softmax / probability writeback -----------
    x_pred = jax.random.normal(k_x4, (256, input_dim), dtype=jnp.float32)
    preds = jax.block_until_ready(
        logistic_regression_predict(x_pred, weight, bias, input_dtype=jnp.float32))
    assert preds.shape == (256,) and preds.dtype == jnp.int32
    ref_p = ref_forward(x_pred, weight, bias)
    ref_lab = jnp.argmax(ref_p, axis=1)
    sorted_p = jnp.sort(ref_p, axis=1)
    near_tie = (sorted_p[:, -1] - sorted_p[:, -2]) < 1e-4   # tolerate exact ties only
    assert bool(jnp.all((preds == ref_lab) | near_tie))

    preds_bf = jax.block_until_ready(logistic_regression_predict(x_small, weight, bias))
    assert preds_bf.shape == (batch_size,)

    print("KERNEL_OK")
</pallas_src>

<mosaic_0001>
module attributes {stable_mosaic.version = 11 : i64} {
  func.func @_logreg_kernel(%arg0: i32, %arg1: memref<2x32xf32, #tpu.memory_space<vmem>>, %arg2: memref<8x32xf32, #tpu.memory_space<vmem>>, %arg3: memref<8x1xf32, #tpu.memory_space<vmem>>, %arg4: memref<8x2xf32, #tpu.memory_space<vmem>>) attributes {dimension_semantics = [#tpu.dimension_semantics<parallel>], iteration_bounds = array<i64: 1>, scalar_prefetch = 0 : i64, scratch_operands = 0 : i64, tpu.core_type = #tpu.core_type<tc>, window_params = [{transform_indices = @transform_0, window_bounds = array<i64: 2, 32>}, {pipeline_mode = #tpu.pipeline_mode<synchronous>, transform_indices = @transform_1, window_bounds = array<i64: 8, 32>}, {pipeline_mode = #tpu.pipeline_mode<synchronous>, transform_indices = @transform_2, window_bounds = array<i64: 8, 1>}, {transform_indices = @transform_3, window_bounds = array<i64: 8, 2>}]} {
    %c0 = arith.constant 0 : index
    %c0_0 = arith.constant 0 : index
    %0 = vector.load %arg2[%c0, %c0_0] : memref<8x32xf32, #tpu.memory_space<vmem>>, vector<8x32xf32>
    %c0_1 = arith.constant 0 : index
    %c0_2 = arith.constant 0 : index
    %1 = vector.load %arg1[%c0_1, %c0_2] : memref<2x32xf32, #tpu.memory_space<vmem>>, vector<2x32xf32>
    %cst = arith.constant dense<0.000000e+00> : vector<8x2xf32>
    %2 = tpu.matmul %0, %1, %cst {dimension_numbers = #tpu.dot_dimension_numbers<[1], [1], [0], [0], [0, 0, 1, 0], [], []>} : vector<8x32xf32>, vector<2x32xf32>, vector<8x2xf32> -> vector<8x2xf32>
    %c0_3 = arith.constant 0 : index
    %c0_4 = arith.constant 0 : index
    %3 = vector.load %arg3[%c0_3, %c0_4] : memref<8x1xf32, #tpu.memory_space<vmem>>, vector<8x1xf32>
    %4 = vector.broadcast %3 : vector<8x1xf32> to vector<8x2xf32>
    %5 = arith.addf %2, %4 : vector<8x2xf32>
    %cst_5 = arith.constant dense<0xFF800000> : vector<2xf32>
    %6 = vector.multi_reduction <maximumf>, %5, %cst_5 [0] : vector<8x2xf32> to vector<2xf32>
    %7 = vector.shape_cast %6 : vector<2xf32> to vector<1x2xf32>
    %8 = vector.broadcast %7 : vector<1x2xf32> to vector<8x2xf32>
    %9 = arith.subf %5, %8 : vector<8x2xf32>
    %10 = math.exp %9 : vector<8x2xf32>
    %cst_6 = arith.constant dense<0.000000e+00> : vector<2xf32>
    %11 = vector.multi_reduction <add>, %10, %cst_6 [0] : vector<8x2xf32> to vector<2xf32>
    %12 = vector.shape_cast %11 : vector<2xf32> to vector<1x2xf32>
    %13 = vector.broadcast %12 : vector<1x2xf32> to vector<8x2xf32>
    %14 = arith.divf %10, %13 : vector<8x2xf32>
    %c0_7 = arith.constant 0 : index
    %c0_8 = arith.constant 0 : index
    %15 = vector.load %arg4[%c0_7, %c0_8] : memref<8x2xf32, #tpu.memory_space<vmem>>, vector<8x2xf32>
    tpu.vector_store %arg4[%c0_7, %c0_8], %14 {strides = array<i32>} : memref<8x2xf32, #tpu.memory_space<vmem>>, vector<8x2xf32>,
    return
  }
  func.func @transform_0(%arg0: i32) -> (i32, i32) {
    %c0_i32 = arith.constant 0 : i32
    %c0_i32_0 = arith.constant 0 : i32
    return %arg0, %c0_i32 : i32, i32
  }
  func.func @transform_1(%arg0: i32) -> (i32, i32) {
    %c0_i32 = arith.constant 0 : i32
    %c0_i32_0 = arith.constant 0 : i32
    %c0_i32_1 = arith.constant 0 : i32
    return %c0_i32, %c0_i32_0 : i32, i32
  }
  func.func @transform_2(%arg0: i32) -> (i32, i32) {
    %c0_i32 = arith.constant 0 : i32
    %c0_i32_0 = arith.constant 0 : i32
    %c0_i32_1 = arith.constant 0 : i32
    return %c0_i32, %c0_i32_0 : i32, i32
  }
  func.func @transform_3(%arg0: i32) -> (i32, i32) {
    %c0_i32 = arith.constant 0 : i32
    %c0_i32_0 = arith.constant 0 : i32
    return %c0_i32, %arg0 : i32, i32
  }
}

</mosaic_0001>

<bundles_post_ra>
// kernel: tpu_custom_call.1
= control target key start
LH: loop header
LB: loop body
LE: loop exit
PB: predicated region body
PF: predicated region fallthrough
CT: control target
= control target key end

     0   :  { %vm22_vm0 = vcmask 261120   ;;  %v141_v0 = vmov 0.0   ;;  %vm142_vm1 = vmmov 0   ;;  %v143_v4 = vmov 0   ;;  %s179_s0 = inlined_call_operand.vmem [shape: f32[2,32], index: 0, kind: input, shape index: {}]   ;;  %s180_s1 = inlined_call_operand.vmem [shape: f32[8,32], index: 1, kind: input, shape index: {}]   ;;  %s181_s2 = inlined_call_operand.vmem [shape: f32[8,1], index: 2, kind: input, shape index: {}]   ;;  %s182_s3 = inlined_call_operand.vmem [shape: f32[8,2], index: 3, kind: output, shape index: {}]  }
   0x1   :  { %128 = vmatprep.subr.mxu0 %v141_v0  ;;  %v15_v1 = vld [vmem:[%s179_s0] sm:$0x3]  ;;  %130 = vmatprep.mubr.msk.f32.mxu0 %vm142_vm1, %v141_v0  ;;  %vm99_vm2 = vcmask 15360  }
   0x2   :  { %v16_v2 = vld [vmem:[%s181_s2] sm:$0xff]  ;;  %129 = vmatpush3.xpose.msk.msra.mxu0 %vm22_vm0, %v15_v1  ;;  %136 = vset.pattern.permute.xlu0 %v143_v4 }
   0x3   :  { %v14_v3 = vld [vmem:[%s180_s1] sm:$0xff]  ;;  %19 = vperm.xlu0 %136, %v16_v2  }
   0x5   :  { %131 = vmatmul.mubr.msk.f32.vlgmr.msra.gmra.mrb[0].mxu0 %vm22_vm0, %v14_v3 }
  0x82   :  { %v20_v5 = vpop.permute.xlu0 %19 }
  0xd8   :  { %v95_v6 = vpop.f32.mrb[0].mxu0 }
  0xd9   :  { %v96_v7 = vadd.f32 %v95_v6, %v20_v5  ;;  %v132_v8 = vpop.f32.mrb[1].mxu0 }
  0xdb   :  { %v100_v9 = vsel %vm99_vm2, %v96_v7, -inf }
  0xdc   :  { %v101_v10 = vrot.slane %v100_v9, 4 }
  0xde   :  { %v102_v11 = vmax.f32 %v100_v9, %v101_v10 }
  0xe0   :  { %v103_v12 = vrot.slane %v102_v11, 2 }
  0xe2   :  { %v104_v13 = vmax.f32 %v102_v11, %v103_v12 }
  0xe4   :  { %v105_v14 = vrot.slane %v104_v13, 1 }
  0xe6   :  { %v106_v15 = vmax.f32 %v104_v13, %v105_v14 }
  0xe8   :  { %v107_v16 = vsub.f32 %v96_v7, %v106_v15 }
  0xea   :  { %v108_v17 = vmul.f32 1.442695, %v107_v16 }
  0xec   :  { %137 = vpow2.f32 %v108_v17 }
  0xf6   :  { %v138_v18 = vpop.eup %137 }
  0xf7   :  { %v110_v19 = vsel %vm99_vm2, %v138_v18, 0.0 }
  0xf8   :  { %v111_v20 = vrot.slane %v110_v19, 4 }
  0xfa   :  { %v112_v21 = vadd.f32 %v111_v20, %v110_v19 }
  0xfc   :  { %v113_v22 = vrot.slane %v112_v21, 2 }
  0xfe   :  { %v114_v23 = vadd.f32 %v113_v22, %v112_v21 }
 0x100   :  { %v115_v24 = vrot.slane %v114_v23, 1 }
 0x102   :  { %v116_v25 = vadd.f32 %v115_v24, %v114_v23 }
 0x104   :  { %139 = vrcp.f32 %v116_v25 }
 0x10e   :  { %v140_v26 = vpop.eup %139 }
 0x10f   :  { %v118_v27 = vmul.f32 %v140_v26, %v138_v18 }
 0x111   :  { %119 = vst.msk [vmem:[%s182_s3] sm:$0xff] %vm99_vm2, %v118_v27 }

</bundles_post_ra>
